<compile_context>
chip_gen: v6e
topology: v6e:2x2x1
jax: 0.10.0
libtpu: 0.0.40
codegen_flags: <defaults>
</compile_context>

<pallas_src>
from functools import partial

import numpy as np
import jax
import jax.numpy as jnp
from jax import lax
from jax.experimental import pallas as pl
from jax.experimental.pallas import tpu as pltpu

_OUT_SUB = 8
_OUT_LANE = 128


def _ee_loss_kernel(csi_ref, power_ref, prep_ref, diag_ref, off_ref, out_ref, *,
                    noise_power, pc, rows, block_rows):
    """One packed-batch row tile -> per-block ee partial sum, broadcast into a
    lane-dense (1, 8, 128) output block (unmasked vst)."""
    i = pl.program_id(0)

    c = csi_ref[...].astype(jnp.float32)        # (TR, W)   W  = P*U*U  (lanes)
    p = power_ref[...].astype(jnp.float32)      # (TR, PU)  PU = P*U

    # Replicate power across each user's row of the flattened csi via a tiny
    # static matmul (MXU) instead of a lane-tile (XLU).
    p_rep = jnp.dot(p, prep_ref[...], preferred_element_type=jnp.float32)   # (TR, W)

    a = (c * c) * p_rep                          # full-lane elementwise

    # Diagonal pick and off-diagonal row sums as static 0/1 selector matmuls.
    valid = jnp.dot(a, diag_ref[...], preferred_element_type=jnp.float32)   # (TR, PU)
    interference = (jnp.dot(a, off_ref[...], preferred_element_type=jnp.float32)
                    + jnp.float32(noise_power))                              # (TR, PU)

    # log2(1 + v/i) == log2(v + i) - log2(i): exact identity, no divide (EUP).
    rate = jnp.log2(valid + interference) - jnp.log2(interference)
    ee = rate / (p + jnp.float32(pc))            # exact divide (1e-5 tolerance)

    # Mask packed-batch rows past the true extent (partial last block).  Must
    # stay a select so garbage-VMEM NaNs are discarded, never multiplied.
    tr = ee.shape[0]
    r_glob = i * block_rows + lax.broadcasted_iota(jnp.int32, (tr, 1), 0)
    ee = jnp.where(r_glob < rows, ee, 0.0)

    out_ref[...] = jnp.full((1, _OUT_SUB, _OUT_LANE), jnp.sum(ee), jnp.float32)


def _selectors(user_num, pack_b):
    """Static 0/1 selector matrices (become resident VMEM constants)."""
    u, uu = user_num, user_num * user_num
    w, pu = pack_b * uu, pack_b * u
    k = np.arange(w)                 # flattened csi index k = (q, j, i)
    m = np.arange(pu)                # packed power / output index m = (q, x)
    q_k, j_k, i_k = k // uu, (k % uu) // u, k % u
    q_m, x_m = m // u, m % u

    # power replication: prep[m, k] = 1 iff same packed batch and i == x
    prep = ((q_m[:, None] == q_k[None, :]) &
            (x_m[:, None] == i_k[None, :])).astype(np.float32)            # (PU, W)
    same = (q_k[:, None] == q_m[None, :]) & (j_k[:, None] == x_m[None, :])
    diag = (same & (i_k[:, None] == x_m[None, :])).astype(np.float32)     # (W, PU)
    off = (same & (i_k[:, None] != x_m[None, :])).astype(np.float32)      # (W, PU)
    return prep, diag, off


def _vmem_capacity_bytes():
    try:
        cap = getattr(pltpu.get_tpu_info(), "vmem_capacity_bytes", None)
        if cap:
            return int(cap)
    except Exception:
        pass
    return 128 * 1024 * 1024


def _choose_rows(rows, width, itemsize):
    """Batch-row tile + VMEM cap per TPU generation (sized on f32 footprint)."""
    cap = _vmem_capacity_bytes()
    if cap <= 64 * 1024 * 1024:          # v7x-class: 64 MiB VMEM, ~3.2 TB/s HBM
        target_f32 = 6 * 1024 * 1024
        vmem_limit = 48 * 1024 * 1024
    else:                                # v5e / v6e: 128 MiB physical VMEM
        target_f32 = 8 * 1024 * 1024
        vmem_limit = 64 * 1024 * 1024

    sub = 8 * max(1, 4 // itemsize)      # sublane packing: f32->8, bf16->16, i8->32
    if rows <= sub:
        return rows, vmem_limit          # single tiny block (== full rows dim)

    tr = min(rows, max(sub, target_f32 // (width * 4)))
    tr = max(sub, (tr // sub) * sub)
    if pl.cdiv(rows, tr) < 2:            # keep >= 2 grid steps for v7x's two TCs
        tr = max(sub, (pl.cdiv(rows, 2) // sub) * sub)
    return tr, vmem_limit


def ee_loss(csi, power, *, noise_power, pc):
    """csi: (B, U, U), power: (B, U) (f32 or bf16) -> scalar f32 loss."""
    b, u, u2 = csi.shape
    assert u == u2 and power.shape == (b, u)
    uu = u * u

    # Pack P batch elements per row so the lane dim P*U*U gets close to 128.
    # Pure row-major reshape: zero-copy, no extra HBM traffic.
    pack_b = 1 if uu >= 128 else max(1, 128 // uu)
    while pack_b > 1 and b % pack_b != 0:
        pack_b -= 1
    w, pu = pack_b * uu, pack_b * u
    rows = b // pack_b

    csi_p = csi.reshape(rows, w)
    power_p = power.reshape(rows, pu)
    prep, diag, off = _selectors(u, pack_b)

    tr, vmem_limit = _choose_rows(rows, w, jnp.dtype(csi.dtype).itemsize)
    grid = pl.cdiv(rows, tr)

    kernel = partial(_ee_loss_kernel, noise_power=float(noise_power),
                     pc=float(pc), rows=rows, block_rows=tr)
    # TODO(synk): if xprof on v7x still shows exposed csi DMA at these tile
    # sizes, add pipeline_mode=pl.Buffered(3) to the csi BlockSpec and re-sweep.
    partial_sums = pl.pallas_call(
        kernel,
        out_shape=jax.ShapeDtypeStruct((grid, _OUT_SUB, _OUT_LANE), jnp.float32),
        grid=(grid,),
        in_specs=[
            pl.BlockSpec((tr, w), lambda i: (i, 0)),     # csi (streamed)
            pl.BlockSpec((tr, pu), lambda i: (i, 0)),    # power (streamed)
            pl.BlockSpec((pu, w), lambda i: (0, 0)),     # selector consts:
            pl.BlockSpec((w, pu), lambda i: (0, 0)),     #   constant block index
            pl.BlockSpec((w, pu), lambda i: (0, 0)),     #   -> fetched once
        ],
        out_specs=pl.BlockSpec((1, _OUT_SUB, _OUT_LANE), lambda i: (i, 0, 0)),
        compiler_params=pltpu.CompilerParams(
            dimension_semantics=("parallel",),
            vmem_limit_bytes=vmem_limit,
        ),
    )(csi_p, power_p, jnp.asarray(prep), jnp.asarray(diag), jnp.asarray(off))

    # Tiny final reduce (+ negate, mean over batch) in plain JAX.
    return -jnp.sum(partial_sums[:, 0, 0]) / jnp.float32(b)


def _ee_loss_ref(csi, power, *, noise_power, pc):
    # Pure-JAX reference mirroring the PyTorch code line-by-line.
    p = power[..., None]                       # (B, U, 1)
    c = jnp.transpose(csi, (0, 2, 1)) ** 2     # (B, U, U)
    rx = c * p                                 # (B, U, U)
    u = csi.shape[1]
    mask = jnp.eye(u, dtype=csi.dtype)
    valid = jnp.sum(rx * mask, axis=1)
    interference = jnp.sum(rx * (1.0 - mask), axis=1) + noise_power
    rate = jnp.log2(1.0 + valid / interference)
    ee = rate / (power + pc)
    return -jnp.mean(jnp.sum(ee, axis=1))


if __name__ == "__main__":
    noise_power = 1e-3
    user_num = 8
    pc = 1.0
    batch = 4

    key = jax.random.PRNGKey(0)
    k1, k2 = jax.random.split(key)
    csi = jax.random.uniform(k1, (batch, user_num, user_num), jnp.float32,
                             minval=0.1, maxval=1.0)
    power = jax.random.uniform(k2, (batch, user_num), jnp.float32,
                               minval=0.1, maxval=1.0)

    loss = ee_loss(csi, power, noise_power=noise_power, pc=pc)
    jax.block_until_ready(loss)

    ref = _ee_loss_ref(csi, power, noise_power=noise_power, pc=pc)
    assert jnp.allclose(loss, ref, rtol=1e-5, atol=1e-5), (loss, ref)

    print("KERNEL_OK")
</pallas_src>

<mosaic_0001>
module attributes {stable_mosaic.version = 11 : i64} {
  func.func @_ee_loss_kernel(%arg0: i32, %arg1: memref<2x128xf32, #tpu.memory_space<vmem>>, %arg2: memref<2x16xf32, #tpu.memory_space<vmem>>, %arg3: memref<16x128xf32, #tpu.memory_space<vmem>>, %arg4: memref<128x16xf32, #tpu.memory_space<vmem>>, %arg5: memref<128x16xf32, #tpu.memory_space<vmem>>, %arg6: memref<1x8x128xf32, #tpu.memory_space<vmem>>) attributes {dimension_semantics = [#tpu.dimension_semantics<parallel>], iteration_bounds = array<i64: 1>, scalar_prefetch = 0 : i64, scratch_operands = 0 : i64, tpu.core_type = #tpu.core_type<tc>, window_params = [{transform_indices = @transform_0, window_bounds = array<i64: 2, 128>}, {transform_indices = @transform_1, window_bounds = array<i64: 2, 16>}, {pipeline_mode = #tpu.pipeline_mode<synchronous>, transform_indices = @transform_2, window_bounds = array<i64: 16, 128>}, {pipeline_mode = #tpu.pipeline_mode<synchronous>, transform_indices = @transform_3, window_bounds = array<i64: 128, 16>}, {pipeline_mode = #tpu.pipeline_mode<synchronous>, transform_indices = @transform_4, window_bounds = array<i64: 128, 16>}, {transform_indices = @transform_5, window_bounds = array<i64: 1, 8, 128>}]} {
    %c0 = arith.constant 0 : index
    %c0_0 = arith.constant 0 : index
    %0 = vector.load %arg1[%c0, %c0_0] : memref<2x128xf32, #tpu.memory_space<vmem>>, vector<2x128xf32>
    %c0_1 = arith.constant 0 : index
    %c0_2 = arith.constant 0 : index
    %1 = vector.load %arg2[%c0_1, %c0_2] : memref<2x16xf32, #tpu.memory_space<vmem>>, vector<2x16xf32>
    %c0_3 = arith.constant 0 : index
    %c0_4 = arith.constant 0 : index
    %2 = vector.load %arg3[%c0_3, %c0_4] : memref<16x128xf32, #tpu.memory_space<vmem>>, vector<16x128xf32>
    %cst = arith.constant dense<0.000000e+00> : vector<2x128xf32>
    %3 = tpu.matmul %1, %2, %cst {dimension_numbers = #tpu.dot_dimension_numbers<[1], [0], [0], [1], [0, 0, 1, 1], [], []>} : vector<2x16xf32>, vector<16x128xf32>, vector<2x128xf32> -> vector<2x128xf32>
    %4 = arith.mulf %0, %0 : vector<2x128xf32>
    %5 = arith.mulf %4, %3 : vector<2x128xf32>
    %c0_5 = arith.constant 0 : index
    %c0_6 = arith.constant 0 : index
    %6 = vector.load %arg4[%c0_5, %c0_6] : memref<128x16xf32, #tpu.memory_space<vmem>>, vector<128x16xf32>
    %cst_7 = arith.constant dense<0.000000e+00> : vector<2x16xf32>
    %7 = tpu.matmul %5, %6, %cst_7 {dimension_numbers = #tpu.dot_dimension_numbers<[1], [0], [0], [1], [0, 0, 1, 1], [], []>} : vector<2x128xf32>, vector<128x16xf32>, vector<2x16xf32> -> vector<2x16xf32>
    %c0_8 = arith.constant 0 : index
    %c0_9 = arith.constant 0 : index
    %8 = vector.load %arg5[%c0_8, %c0_9] : memref<128x16xf32, #tpu.memory_space<vmem>>, vector<128x16xf32>
    %cst_10 = arith.constant dense<0.000000e+00> : vector<2x16xf32>
    %9 = tpu.matmul %5, %8, %cst_10 {dimension_numbers = #tpu.dot_dimension_numbers<[1], [0], [0], [1], [0, 0, 1, 1], [], []>} : vector<2x128xf32>, vector<128x16xf32>, vector<2x16xf32> -> vector<2x16xf32>
    %cst_11 = arith.constant 1.000000e-03 : f32
    %10 = vector.broadcast %cst_11 : f32 to vector<2x16xf32>
    %11 = arith.addf %9, %10 : vector<2x16xf32>
    %12 = arith.addf %7, %11 : vector<2x16xf32>
    %13 = math.log %12 : vector<2x16xf32>
    %cst_12 = arith.constant 2.000000e+00 : f32
    %14 = math.log %cst_12 : f32
    %15 = vector.broadcast %14 : f32 to vector<2x16xf32>
    %16 = arith.divf %13, %15 : vector<2x16xf32>
    %17 = math.log %11 : vector<2x16xf32>
    %cst_13 = arith.constant 2.000000e+00 : f32
    %18 = math.log %cst_13 : f32
    %19 = vector.broadcast %18 : f32 to vector<2x16xf32>
    %20 = arith.divf %17, %19 : vector<2x16xf32>
    %21 = arith.subf %16, %20 : vector<2x16xf32>
    %cst_14 = arith.constant 1.000000e+00 : f32
    %22 = vector.broadcast %cst_14 : f32 to vector<2x16xf32>
    %23 = arith.addf %1, %22 : vector<2x16xf32>
    %24 = arith.divf %21, %23 : vector<2x16xf32>
    %c2_i32 = arith.constant 2 : i32
    %25 = arith.muli %arg0, %c2_i32 : i32
    %26 = tpu.iota {dimensions = array<i32: 0>} : vector<2x1xi32>
    %27 = vector.broadcast %25 : i32 to vector<2x1xi32>
    %28 = arith.addi %27, %26 : vector<2x1xi32>
    %c2_i32_15 = arith.constant 2 : i32
    %29 = vector.broadcast %c2_i32_15 : i32 to vector<2x1xi32>
    %30 = arith.cmpi slt, %28, %29 : vector<2x1xi32>
    %cst_16 = arith.constant 0.000000e+00 : f32
    %31 = vector.shape_cast %30 : vector<2x1xi1> to vector<2x1xi1>
    %32 = vector.broadcast %31 : vector<2x1xi1> to vector<2x16xi1>
    %33 = vector.broadcast %cst_16 : f32 to vector<2x16xf32>
    %34 = arith.select %32, %24, %33 : vector<2x16xi1>, vector<2x16xf32>
    %35 = vector.shape_cast %34 : vector<2x16xf32> to vector<1x2x16xf32>
    %cst_17 = arith.constant dense<0.000000e+00> : vector<1xf32>
    %36 = vector.multi_reduction <add>, %35, %cst_17 [1, 2] : vector<1x2x16xf32> to vector<1xf32>
    %37 = vector.shape_cast %36 : vector<1xf32> to vector<1x1x1xf32>
    %38 = vector.extract %37[0, 0, 0] : f32 from vector<1x1x1xf32>
    %39 = vector.broadcast %38 : f32 to vector<1x8x128xf32>
    %c0_18 = arith.constant 0 : index
    %c0_19 = arith.constant 0 : index
    %c0_20 = arith.constant 0 : index
    %40 = vector.load %arg6[%c0_18, %c0_19, %c0_20] : memref<1x8x128xf32, #tpu.memory_space<vmem>>, vector<1x8x128xf32>
    tpu.vector_store %arg6[%c0_18, %c0_19, %c0_20], %39 {strides = array<i32>} : memref<1x8x128xf32, #tpu.memory_space<vmem>>, vector<1x8x128xf32>,
    return
  }
  func.func @transform_0(%arg0: i32) -> (i32, i32) {
    %c0_i32 = arith.constant 0 : i32
    %c0_i32_0 = arith.constant 0 : i32
    return %arg0, %c0_i32 : i32, i32
  }
  func.func @transform_1(%arg0: i32) -> (i32, i32) {
    %c0_i32 = arith.constant 0 : i32
    %c0_i32_0 = arith.constant 0 : i32
    return %arg0, %c0_i32 : i32, i32
  }
  func.func @transform_2(%arg0: i32) -> (i32, i32) {
    %c0_i32 = arith.constant 0 : i32
    %c0_i32_0 = arith.constant 0 : i32
    %c0_i32_1 = arith.constant 0 : i32
    return %c0_i32, %c0_i32_0 : i32, i32
  }
  func.func @transform_3(%arg0: i32) -> (i32, i32) {
    %c0_i32 = arith.constant 0 : i32
    %c0_i32_0 = arith.constant 0 : i32
    %c0_i32_1 = arith.constant 0 : i32
    return %c0_i32, %c0_i32_0 : i32, i32
  }
  func.func @transform_4(%arg0: i32) -> (i32, i32) {
    %c0_i32 = arith.constant 0 : i32
    %c0_i32_0 = arith.constant 0 : i32
    %c0_i32_1 = arith.constant 0 : i32
    return %c0_i32, %c0_i32_0 : i32, i32
  }
  func.func @transform_5(%arg0: i32) -> (i32, i32, i32) {
    %c0_i32 = arith.constant 0 : i32
    %c0_i32_0 = arith.constant 0 : i32
    %c0_i32_1 = arith.constant 0 : i32
    return %arg0, %c0_i32, %c0_i32_0 : i32, i32, i32
  }
}

</mosaic_0001>

<bundles_post_ra>
// kernel: tpu_custom_call.1
= control target key start
LH: loop header
LB: loop body
LE: loop exit
PB: predicated region body
PF: predicated region fallthrough
CT: control target
= control target key end

     0   :  { %v468_v1 = vmov 0.0   ;;  %vm469_vm0 = vmmov 0   ;;  %vm25_vm1 = vcmask 130048   ;;  %s656_s0 = inlined_call_operand.vmem [shape: f32[2,128], index: 0, kind: input, shape index: {}]   ;;  %s657_s1 = inlined_call_operand.vmem [shape: f32[2,16], index: 1, kind: input, shape index: {}]   ;;  %s658_s2 = inlined_call_operand.vmem [shape: f32[16,128], index: 2, kind: input, shape index: {}]   ;;  %s659_s3 = inlined_call_operand.vmem [shape: f32[128,16], index: 3, kind: input, shape index: {}]   ;;  %s660_s4 = inlined_call_operand.vmem [shape: f32[128,16], index: 4, kind: input, shape index: {}]   ;;  %s661_s5 = inlined_call_operand.hbm [shape: f32[1,8,128], index: 5, kind: output, shape index: {}]  }
   0x1   :  { %v24_v0 = vld [vmem:[%s658_s2 + $0x8] sm:$0xff]  ;;  %358 = vmatprep.subr.mxu0 %v468_v1  ;;  %v23_v2 = vld [vmem:[%s658_s2] sm:$0xff]  ;;  %362 = vmatprep.mubr.msk.f32.mxu0 %vm469_vm0, %v468_v1  ;;  %v132_v3 = vld [vmem:[%s660_s4 + $0x78] sm:$0xff] }
   0x2   :  { %359 = vmatpush3.msra.mxu0 %v24_v0  ;;  %v516_v4 = vld [vmem:[%s657_s1] sm:$0x3]  ;;  %365 = vmatprep.subr.mxu1 %v468_v1  ;;  %v116_v5 = vld [vmem:[%s659_s3 + $0x78] sm:$0xff]  ;;  %v131_v6 = vld [vmem:[%s660_s4 + $0x70] sm:$0xff] }
   0x3   :  { %360 = vmatprep.subr.mxu0 %v468_v1  ;;  %366 = vmatpush3.msra.mxu1 %v132_v3  ;;  %v115_v7 = vld [vmem:[%s659_s3 + $0x70] sm:$0xff]  ;;  %v130_v8 = vld [vmem:[%s660_s4 + $0x68] sm:$0xff]  ;;  %v129_v10 = vld [vmem:[%s660_s4 + $0x60] sm:$0xff] }
   0x4   :  { %361 = vmatpush3.msra.mxu0 %v23_v2  ;;  %367 = vmatprep.subr.mxu1 %v468_v1  ;;  %v114_v9 = vld [vmem:[%s659_s3 + $0x68] sm:$0xff]  ;;  %v113_v11 = vld [vmem:[%s659_s3 + $0x60] sm:$0xff]  ;;  %v128_v12 = vld [vmem:[%s660_s4 + $0x58] sm:$0xff] }
   0x5   :  { %363 = vmatmul.mubr.msk.f32.vlgmr.msra.gmra.mxu0 %vm25_vm1, %v516_v4  ;;  %400 = vmatprep.subr.mxu0 %v468_v1 }
   0x6   :  { %401 = vmatpush3.msra.mxu0 %v116_v5  ;;  %368 = vmatpush3.msra.mxu1 %v131_v6 }
   0x7   :  { %402 = vmatprep.subr.mxu0 %v468_v1  ;;  %369 = vmatprep.subr.mxu1 %v468_v1 }
   0x8   :  { %403 = vmatpush3.msra.mxu0 %v115_v7  ;;  %370 = vmatpush3.msra.mxu1 %v130_v8 }
   0x9   :  { %404 = vmatprep.subr.mxu0 %v468_v1  ;;  %371 = vmatprep.subr.mxu1 %v468_v1 }
   0xa   :  { %405 = vmatpush3.msra.mxu0 %v114_v9  ;;  %372 = vmatpush3.msra.mxu1 %v129_v10 }
   0xb   :  { %10 = vsyncpa [#allocation3], 0  ;;  %406 = vmatprep.subr.mxu0 %v468_v1  ;;  %373 = vmatprep.subr.mxu1 %v468_v1  ;;  %v112_v13 = vld [vmem:[%s659_s3 + $0x58] sm:$0xff]  ;;  %v127_v14 = vld [vmem:[%s660_s4 + $0x50] sm:$0xff]  ;;  %v281_v47 = vadd.f32 1.0, %v516_v4  ;;  %v285_v49 = vlaneseq  ;;  %vm293_vm3 = vcmask 123904  }
   0xc   :  { %407 = vmatpush3.msra.mxu0 %v113_v11  ;;  %374 = vmatpush3.msra.mxu1 %v128_v12  ;;  %v111_v15 = vld [vmem:[%s659_s3 + $0x50] sm:$0xff]  ;;  %v126_v16 = vld [vmem:[%s660_s4 + $0x48] sm:$0xff]  ;;  %v125_v18 = vld [vmem:[%s660_s4 + $0x40] sm:$0xff] }
   0xd   :  { %408 = vmatprep.subr.mxu0 %v468_v1  ;;  %375 = vmatprep.subr.mxu1 %v468_v1  ;;  %v110_v17 = vld [vmem:[%s659_s3 + $0x48] sm:$0xff]  ;;  %v109_v19 = vld [vmem:[%s659_s3 + $0x40] sm:$0xff]  ;;  %v124_v20 = vld [vmem:[%s660_s4 + $0x38] sm:$0xff]  ;;  %v286_v53 = vshrl.u32 %v285_v49, 7 }
   0xe   :  { %409 = vmatpush3.msra.mxu0 %v112_v13  ;;  %376 = vmatpush3.msra.mxu1 %v127_v14  ;;  %v108_v21 = vld [vmem:[%s659_s3 + $0x38] sm:$0xff]  ;;  %v123_v22 = vld [vmem:[%s660_s4 + $0x30] sm:$0xff]  ;;  %v122_v24 = vld [vmem:[%s660_s4 + $0x28] sm:$0xff] }
   0xf   :  { %410 = vmatprep.subr.mxu0 %v468_v1  ;;  %377 = vmatprep.subr.mxu1 %v468_v1  ;;  %v107_v23 = vld [vmem:[%s659_s3 + $0x30] sm:$0xff]  ;;  %v106_v25 = vld [vmem:[%s659_s3 + $0x28] sm:$0xff]  ;;  %v121_v26 = vld [vmem:[%s660_s4 + $0x20] sm:$0xff]  ;;  %vm289_vm2 = vcmp.lt.s32.totalorder %v286_v53, 2 }
  0x10   :  { %411 = vmatpush3.msra.mxu0 %v111_v15  ;;  %378 = vmatpush3.msra.mxu1 %v126_v16  ;;  %v105_v27 = vld [vmem:[%s659_s3 + $0x20] sm:$0xff]  ;;  %v120_v28 = vld [vmem:[%s660_s4 + $0x18] sm:$0xff]  ;;  %v119_v30 = vld [vmem:[%s660_s4 + $0x10] sm:$0xff] }
  0x11   :  { %412 = vmatprep.subr.mxu0 %v468_v1  ;;  %379 = vmatprep.subr.mxu1 %v468_v1  ;;  %v104_v29 = vld [vmem:[%s659_s3 + $0x18] sm:$0xff]  ;;  %v103_v31 = vld [vmem:[%s659_s3 + $0x10] sm:$0xff]  ;;  %v118_v32 = vld [vmem:[%s660_s4 + $0x8] sm:$0xff] }
  0x12   :  { %413 = vmatpush3.msra.mxu0 %v110_v17  ;;  %380 = vmatpush3.msra.mxu1 %v125_v18  ;;  %v102_v33 = vld [vmem:[%s659_s3 + $0x8] sm:$0xff]  ;;  %v117_v34 = vld [vmem:[%s660_s4] sm:$0xff] }
  0x13   :  { %414 = vmatprep.subr.mxu0 %v468_v1  ;;  %381 = vmatprep.subr.mxu1 %v468_v1  ;;  %v101_v35 = vld [vmem:[%s659_s3] sm:$0xff] }
  0x14   :  { %415 = vmatpush3.msra.mxu0 %v109_v19  ;;  %382 = vmatpush3.msra.mxu1 %v124_v20  ;;  %v21_v36 = vld [vmem:[%s656_s0] sm:$0x3]  ;;  %s470_s0 = smov [#allocation2]  }
  0x15   :  { %416 = vmatprep.subr.mxu0 %v468_v1  ;;  %383 = vmatprep.subr.mxu1 %v468_v1  ;;  %v99_v37 = vmul.f32 %v21_v36, %v21_v36  ;;  %s312_s3 = sshll.u32 %s470_s0, 4  ;;  %s313_s3 = int_to_ptr.vmem [resolvable:$true] %s312_s3 }
  0x16   :  { %417 = vmatpush3.msra.mxu0 %v108_v21  ;;  %384 = vmatpush3.msra.mxu1 %v123_v22  ;;  %s446_s9 = scalar_lea.vmem %s313_s3, 128  ;;  %p451_p1 = scmp.lt.s32.totalorder %s313_s3, %s313_s3 }
  0x17   :  { %418 = vmatprep.subr.mxu0 %v468_v1  ;;  %385 = vmatprep.subr.mxu1 %v468_v1  ;;  %p447_p0 = scmp.ne.s32.totalorder %s313_s3, %s446_s9  ;;  %p452_p2 = scmp.lt.s32.totalorder %s446_s9, %s446_s9 }
  0x18   :  { %419 = vmatpush3.msra.mxu0 %v107_v23  ;;  %386 = vmatpush3.msra.mxu1 %v122_v24 }
  0x19   :  { %420 = vmatprep.subr.mxu0 %v468_v1  ;;  %387 = vmatprep.subr.mxu1 %v468_v1  ;;  %p453_p3 = por %p452_p2, %p451_p1 }
  0x1a   :  { %421 = vmatpush3.msra.mxu0 %v106_v25  ;;  %388 = vmatpush3.msra.mxu1 %v121_v26 }
  0x1b   :  { %422 = vmatprep.subr.mxu0 %v468_v1  ;;  %389 = vmatprep.subr.mxu1 %v468_v1  ;;  %p454_p4 = pnand %p453_p3, %p447_p0 }
  0x1c   :  { %423 = vmatpush3.msra.mxu0 %v105_v27  ;;  %390 = vmatpush3.msra.mxu1 %v120_v28 }
  0x1d   :  { %424 = vmatprep.subr.mxu0 %v468_v1  ;;  %391 = vmatprep.subr.mxu1 %v468_v1 }
  0x1e   :  { %425 = vmatpush3.msra.mxu0 %v104_v29  ;;  %392 = vmatpush3.msra.mxu1 %v119_v30 }
  0x1f   :  { %426 = vmatprep.subr.mxu0 %v468_v1  ;;  %393 = vmatprep.subr.mxu1 %v468_v1 }
  0x20   :  { %427 = vmatpush3.msra.mxu0 %v103_v31  ;;  %397 = vmatprep.mubr.msk.f32.mxu1 %vm469_vm0, %v468_v1 }
  0x21   :  { %428 = vmatprep.subr.mxu0 %v468_v1  ;;  %432 = vmatprep.mubr.msk.f32.mxu0 %vm469_vm0, %v468_v1 }
  0x22   :  { %394 = vmatpush3.msra.mxu1 %v118_v32  ;;  %429 = vmatpush3.msra.mxu0 %v102_v33 }
  0x23   :  { %395 = vmatprep.subr.mxu1 %v468_v1  ;;  %430 = vmatprep.subr.mxu0 %v468_v1 }
  0x24   :  { %396 = vmatpush3.msra.mxu1 %v117_v34  ;;  %431 = vmatpush3.msra.mxu0 %v101_v35 }
  0xc5   :  { %v95_v38 = vpop.f32.mrf.mxu0 }
  0xc6   :  { %v100_v39 = vmul.f32 %v99_v37, %v95_v38 }
  0xc7   :  { %v364_v40 = vpop.f32.mrf.mxu0 }
  0xc8   :  { %398 = vmatmul.mubr.f32.vlgmr.msra.gmra.mxu1 %v100_v39  ;;  %433 = vmatmul.mubr.f32.vlgmr.msra.gmra.mxu0 %v100_v39 }
 0x188   :  { %v199_v41 = vpop.f32.mrf.mxu1  ;;  %v269_v42 = vpop.f32.mrf.mxu0 }
 0x189   :  { %v200_v43 = vadd.f32 0.001, %v199_v41 }
 0x18a   :  { %v399_v44 = vpop.f32.mrf.mxu1  ;;  %v434_v45 = vpop.f32.mrf.mxu0 }
 0x18b   :  { %440 = vlog2.f32 %v200_v43  ;;  %v270_v46 = vadd.f32 %v269_v42, %v200_v43 }
 0x18d   :  { %442 = vlog2.f32 %v270_v46 }
 0x18e   :  { %444 = vrcp.f32 %v281_v47 }
 0x198   :  { %v441_v48 = vpop.eup %440 }
 0x199   :  { %v278_v50 = vmul.f32 0.6931472, %v441_v48 }
 0x19a   :  { %v443_v51 = vpop.eup %442 }
 0x19b   :  { %v274_v52 = vmul.f32 0.6931472, %v443_v51  ;;  %v279_v54 = vmul.f32 1.442695, %v278_v50  ;;  %v445_v56 = vpop.eup %444 }
 0x19d   :  { %v276_v55 = vmul.f32 1.442695, %v274_v52 }
 0x19f   :  { %v280_v57 = vsub.f32 %v276_v55, %v279_v54 }
 0x1a1   :  { %v283_v58 = vmul.f32 %v445_v56, %v280_v57 }
 0x1a3   :  { %v292_v59 = vsel %vm289_vm2, %v283_v58, 0.0 }
 0x1a4   :  { %v294_v60 = vsel %vm293_vm3, %v292_v59, 0.0 }
 0x1a5   :  { %295 = vadd.xlane.f32.xlu0 %v294_v60 }
 0x22e   :  { %v296_v61 = vpop.xlane.xlu0 %295 }
 0x22f   :  { %v297_v62 = vrot.slane %v296_v61, 4 }
 0x231   :  { %v298_v63 = vadd.f32 %v297_v62, %v296_v61 }
 0x233   :  { %v299_v0 = vrot.slane %v298_v63, 2 }
 0x235   :  { %v300_v1 = vadd.f32 %v299_v0, %v298_v63 }
 0x237   :  { %v301_v2 = vrot.slane %v300_v1, 1 }
 0x239   :  { %v302_v3 = vadd.f32 %v301_v2, %v300_v1 }
 0x23b   :  { %435 = vpush %v302_v3 }
 0x26c   :  { %s436_s4 = spop %435 }
 0x26d   :  { %v304_v4 = vstv %s436_s4 }
 0x26e   :  { %305 = vst [vmem:[#allocation2] sm:$0xff] %v304_v4 }
 0x26f   :  { %457 = shalt.err (!%p454_p4)
}
 0x270   :  { %315 = dma.vmem_to_hbm [thread:$0]  %s313_s3, 128, %s661_s5, [#allocation3]  }
 0x271   :  { %466 = dma.done.wait [#allocation3], 128  }
 0x272   :  { %467 = vsyncadd [#allocation3], 4294967168 }
 0x273   :  { %319 = vsyncpa [#allocation3], 1 }

</bundles_post_ra>
